<compile_context>
chip_gen: v7x
topology: tpu7x:2x2x1
jax: 0.10.0
libtpu: 0.0.40
codegen_flags: <defaults>
</compile_context>

<pallas_src>
import functools

import jax
import jax.numpy as jnp
import numpy as np
from jax.experimental import pallas as pl
from jax.experimental.pallas import tpu as pltpu

D = 100      # embedding dim (fixed by Conv2d kernel width / fc in_features)
C = 100      # conv output channels
NCLS = 2     # fc out_features

DP = 128     # lane-padded embedding dim
CP = 128     # lane-padded conv channels
OP = 128     # lane-padded output width (logits live in [:, :NCLS])


def _round_up(x, m):
    return (x + m - 1) // m * m


def textcnn_kernel(emb_ref, wconv_ref, bconv_ref, wfc_ref, bfc_ref, out_ref, *,
                   seq_len):
    # emb_ref   : (Bt, Lp+2, DP) f32, zero-padded (halo of 1 each side + seq/batch pad)
    # wconv_ref : (3*DP, CP)     fused conv taps (tap k occupies rows [k*DP, k*DP+D))
    # bconv_ref : (1, CP)
    # wfc_ref   : (CP, OP)       fc weight, only [:C, :NCLS] populated
    # bfc_ref   : (1, OP)
    # out_ref   : (Bt, OP)       lane-dense logits slab
    bt, lp2, dp = emb_ref.shape
    lp = lp2 - 2
    cp = wconv_ref.shape[1]

    # im2col for the k=3 conv: tap k of output position t reads padded row t+k.
    x = jnp.concatenate(
        [emb_ref[:, 0:lp, :], emb_ref[:, 1:lp + 1, :], emb_ref[:, 2:lp + 2, :]],
        axis=-1,
    ).reshape(bt * lp, 3 * dp)                                  # (Bt*Lp, 3*DP)

    # Fused conv taps as ONE matmul (K = 3*DP = 384), + bias, ReLU.
    acc = jnp.dot(x, wconv_ref[...], preferred_element_type=jnp.float32)
    acc = jnp.maximum(acc + bconv_ref[...], 0.0)                # (Bt*Lp, CP)
    acc = acc.reshape(bt, lp, cp)

    # Zero out padded sequence positions (ReLU output >= 0, so 0 is inert for the max).
    if lp != seq_len:
        pos = jax.lax.broadcasted_iota(jnp.int32, (bt, lp, cp), 1)
        acc = jnp.where(pos < seq_len, acc, 0.0)

    # max_pool1d over the full sequence.
    pooled = jnp.max(acc, axis=1)                               # (Bt, CP)

    # fc1 into a 128-wide padded slab (columns >= NCLS are zero weight/bias).
    logits = jnp.dot(pooled, wfc_ref[...],
                     preferred_element_type=jnp.float32) + bfc_ref[...]
    out_ref[...] = logits.astype(out_ref.dtype)


def net_forward(tokens, embedding_table, w_conv, b_conv, w_fc, b_fc, *,
                batch_tile=128):
    """tokens: (B, L) int32. Returns logits (B, 2) float32."""
    B, L = tokens.shape
    V = embedding_table.shape[0]

    Lp = _round_up(L, 8)                       # sublane-aligned sequence length
    Bt = min(batch_tile, _round_up(B, 8))      # batch tile (multiple of 8)
    Bp = _round_up(B, Bt)

    # --- plain-JAX glue: embedding gather + lane-padded parameter layout ---
    # NOTE: for v6e/v7x these could be cast to bfloat16 (MXU full rate, half the DMA
    # bytes); kept f32 here for exactness across generations.
    emb_tab = jnp.zeros((V, DP), jnp.float32).at[:, :D].set(
        embedding_table.astype(jnp.float32))
    emb = jnp.take(emb_tab, tokens, axis=0)                         # (B, L, DP)
    # halo of 1 each side for the k=3 conv, plus seq/batch padding to tile sizes.
    emb = jnp.pad(emb, ((0, Bp - B), (1, 1 + Lp - L), (0, 0)))      # (Bp, Lp+2, DP)

    # torch conv weight (C, 1, 3, D) -> fused (3*DP, CP)
    w = jnp.transpose(w_conv[:, 0, :, :], (1, 2, 0)).astype(jnp.float32)   # (3, D, C)
    w_fused = (jnp.zeros((3, DP, CP), jnp.float32)
               .at[:, :D, :C].set(w)
               .reshape(3 * DP, CP))
    b_conv_p = jnp.zeros((1, CP), jnp.float32).at[0, :C].set(
        b_conv.astype(jnp.float32))

    # torch fc weight (2, C) -> (CP, OP); bias -> (1, OP)
    w_fc_p = jnp.zeros((CP, OP), jnp.float32).at[:C, :NCLS].set(
        w_fc.T.astype(jnp.float32))
    b_fc_p = jnp.zeros((1, OP), jnp.float32).at[0, :NCLS].set(
        b_fc.astype(jnp.float32))

    out = pl.pallas_call(
        functools.partial(textcnn_kernel, seq_len=L),
        out_shape=jax.ShapeDtypeStruct((Bp, OP), jnp.float32),
        grid=(Bp // Bt,),
        in_specs=[
            pl.BlockSpec((Bt, Lp + 2, DP), lambda b: (b, 0, 0)),   # padded embeddings
            pl.BlockSpec((3 * DP, CP),     lambda b: (0, 0)),      # fused conv weight
            pl.BlockSpec((1, CP),          lambda b: (0, 0)),      # conv bias
            pl.BlockSpec((CP, OP),         lambda b: (0, 0)),      # fc weight
            pl.BlockSpec((1, OP),          lambda b: (0, 0)),      # fc bias
        ],
        out_specs=pl.BlockSpec((Bt, OP), lambda b: (b, 0)),
        compiler_params=pltpu.CompilerParams(
            dimension_semantics=("parallel",)),
    )(emb, w_fused, b_conv_p, w_fc_p, b_fc_p)

    return out[:B, :NCLS]


def ref_forward(tokens, embedding_table, w_conv, b_conv, w_fc, b_fc):
    """Pure-JAX reference mirroring the PyTorch forward semantics."""
    emb = jnp.take(embedding_table, tokens, axis=0)               # (B, L, D)
    B, L, _ = emb.shape
    xp = jnp.pad(emb, ((0, 0), (1, 1), (0, 0)))                   # (B, L+2, D)
    windows = jnp.stack([xp[:, t:t + 3, :] for t in range(L)], axis=1)  # (B, L, 3, D)
    conv = jnp.einsum('bltd,ctd->blc', windows, w_conv[:, 0, :, :],
                      precision=jax.lax.Precision.HIGHEST) + b_conv      # (B, L, C)
    conv = jnp.maximum(conv, 0.0)
    pooled = jnp.max(conv, axis=1)                                # (B, C)
    return jnp.dot(pooled, w_fc.T,
                   precision=jax.lax.Precision.HIGHEST) + b_fc    # (B, 2)


if __name__ == "__main__":
    B, L, V = 2, 8, 50

    key = jax.random.PRNGKey(0)
    k_tok, k_emb, k_wc, k_bc, k_wf, k_bf = jax.random.split(key, 6)

    tokens = jax.random.randint(k_tok, (B, L), 0, V, dtype=jnp.int32)
    embedding_table = jax.random.normal(k_emb, (V, D), dtype=jnp.float32)

    # Deterministic synthetic parameters (shapes from Net.__init__).
    w_conv = 0.05 * jax.random.normal(k_wc, (C, 1, 3, D), dtype=jnp.float32)
    b_conv = 0.01 * jax.random.normal(k_bc, (C,), dtype=jnp.float32)
    w_fc = 0.05 * jax.random.normal(k_wf, (NCLS, C), dtype=jnp.float32)
    b_fc = 0.01 * jax.random.normal(k_bf, (NCLS,), dtype=jnp.float32)

    out = net_forward(tokens, embedding_table, w_conv, b_conv, w_fc, b_fc)
    out = jax.block_until_ready(out)

    ref = ref_forward(tokens, embedding_table, w_conv, b_conv, w_fc, b_fc)
    np.testing.assert_allclose(np.asarray(out), np.asarray(ref),
                               rtol=2e-3, atol=2e-3)

    print("KERNEL_OK")
</pallas_src>

<mosaic_0001>
module attributes {stable_mosaic.version = 11 : i64} {
  func.func @textcnn_kernel(%arg0: i32, %arg1: memref<8x10x128xf32, #tpu.memory_space<vmem>>, %arg2: memref<384x128xf32, #tpu.memory_space<vmem>>, %arg3: memref<1x128xf32, #tpu.memory_space<vmem>>, %arg4: memref<128x128xf32, #tpu.memory_space<vmem>>, %arg5: memref<1x128xf32, #tpu.memory_space<vmem>>, %arg6: memref<8x128xf32, #tpu.memory_space<vmem>>) attributes {dimension_semantics = [#tpu.dimension_semantics<parallel>], iteration_bounds = array<i64: 1>, scalar_prefetch = 0 : i64, scratch_operands = 0 : i64, tpu.core_type = #tpu.core_type<tc>, window_params = [{transform_indices = @transform_0, window_bounds = array<i64: 8, 10, 128>}, {pipeline_mode = #tpu.pipeline_mode<synchronous>, transform_indices = @transform_1, window_bounds = array<i64: 384, 128>}, {pipeline_mode = #tpu.pipeline_mode<synchronous>, transform_indices = @transform_2, window_bounds = array<i64: 1, 128>}, {pipeline_mode = #tpu.pipeline_mode<synchronous>, transform_indices = @transform_3, window_bounds = array<i64: 128, 128>}, {pipeline_mode = #tpu.pipeline_mode<synchronous>, transform_indices = @transform_4, window_bounds = array<i64: 1, 128>}, {transform_indices = @transform_5, window_bounds = array<i64: 8, 128>}]} {
    %c0 = arith.constant 0 : index
    %c0_0 = arith.constant 0 : index
    %c0_1 = arith.constant 0 : index
    %0 = vector.load %arg1[%c0, %c0_0, %c0_1] : memref<8x10x128xf32, #tpu.memory_space<vmem>>, vector<8x8x128xf32>
    %c0_2 = arith.constant 0 : index
    %c1 = arith.constant 1 : index
    %c0_3 = arith.constant 0 : index
    %1 = vector.load %arg1[%c0_2, %c1, %c0_3] : memref<8x10x128xf32, #tpu.memory_space<vmem>>, vector<8x8x128xf32>
    %c0_4 = arith.constant 0 : index
    %c2 = arith.constant 2 : index
    %c0_5 = arith.constant 0 : index
    %2 = vector.load %arg1[%c0_4, %c2, %c0_5] : memref<8x10x128xf32, #tpu.memory_space<vmem>>, vector<8x8x128xf32>
    %3 = tpu.concatenate %0, %1, %2 in 2 : vector<8x8x128xf32>, vector<8x8x128xf32>, vector<8x8x128xf32> -> vector<8x8x384xf32>
    %4 = vector.shape_cast %3 : vector<8x8x384xf32> to vector<64x384xf32>
    %c0_6 = arith.constant 0 : index
    %c0_7 = arith.constant 0 : index
    %5 = vector.load %arg2[%c0_6, %c0_7] : memref<384x128xf32, #tpu.memory_space<vmem>>, vector<384x128xf32>
    %cst = arith.constant dense<0.000000e+00> : vector<64x128xf32>
    %6 = tpu.matmul %4, %5, %cst {dimension_numbers = #tpu.dot_dimension_numbers<[1], [0], [0], [1], [0, 0, 1, 1], [], []>} : vector<64x384xf32>, vector<384x128xf32>, vector<64x128xf32> -> vector<64x128xf32>
    %c0_8 = arith.constant 0 : index
    %c0_9 = arith.constant 0 : index
    %7 = vector.load %arg3[%c0_8, %c0_9] : memref<1x128xf32, #tpu.memory_space<vmem>>, vector<1x128xf32>
    %8 = vector.broadcast %7 : vector<1x128xf32> to vector<64x128xf32>
    %9 = arith.addf %6, %8 : vector<64x128xf32>
    %cst_10 = arith.constant 0.000000e+00 : f32
    %10 = vector.broadcast %cst_10 : f32 to vector<64x128xf32>
    %11 = arith.maximumf %9, %10 : vector<64x128xf32>
    %12 = vector.shape_cast %11 : vector<64x128xf32> to vector<8x8x128xf32>
    %cst_11 = arith.constant dense<0xFF800000> : vector<8x128xf32>
    %13 = vector.multi_reduction <maximumf>, %12, %cst_11 [1] : vector<8x8x128xf32> to vector<8x128xf32>
    %c0_12 = arith.constant 0 : index
    %c0_13 = arith.constant 0 : index
    %14 = vector.load %arg4[%c0_12, %c0_13] : memref<128x128xf32, #tpu.memory_space<vmem>>, vector<128x128xf32>
    %cst_14 = arith.constant dense<0.000000e+00> : vector<8x128xf32>
    %15 = tpu.matmul %13, %14, %cst_14 {dimension_numbers = #tpu.dot_dimension_numbers<[1], [0], [0], [1], [0, 0, 1, 1], [], []>} : vector<8x128xf32>, vector<128x128xf32>, vector<8x128xf32> -> vector<8x128xf32>
    %c0_15 = arith.constant 0 : index
    %c0_16 = arith.constant 0 : index
    %16 = vector.load %arg5[%c0_15, %c0_16] : memref<1x128xf32, #tpu.memory_space<vmem>>, vector<1x128xf32>
    %17 = vector.broadcast %16 : vector<1x128xf32> to vector<8x128xf32>
    %18 = arith.addf %15, %17 : vector<8x128xf32>
    %c0_17 = arith.constant 0 : index
    %c0_18 = arith.constant 0 : index
    %19 = vector.load %arg6[%c0_17, %c0_18] : memref<8x128xf32, #tpu.memory_space<vmem>>, vector<8x128xf32>
    tpu.vector_store %arg6[%c0_17, %c0_18], %18 {strides = array<i32>} : memref<8x128xf32, #tpu.memory_space<vmem>>, vector<8x128xf32>,
    return
  }
  func.func @transform_0(%arg0: i32) -> (i32, i32, i32) {
    %c0_i32 = arith.constant 0 : i32
    %c0_i32_0 = arith.constant 0 : i32
    %c0_i32_1 = arith.constant 0 : i32
    return %arg0, %c0_i32, %c0_i32_0 : i32, i32, i32
  }
  func.func @transform_1(%arg0: i32) -> (i32, i32) {
    %c0_i32 = arith.constant 0 : i32
    %c0_i32_0 = arith.constant 0 : i32
    %c0_i32_1 = arith.constant 0 : i32
    return %c0_i32, %c0_i32_0 : i32, i32
  }
  func.func @transform_2(%arg0: i32) -> (i32, i32) {
    %c0_i32 = arith.constant 0 : i32
    %c0_i32_0 = arith.constant 0 : i32
    %c0_i32_1 = arith.constant 0 : i32
    return %c0_i32, %c0_i32_0 : i32, i32
  }
  func.func @transform_3(%arg0: i32) -> (i32, i32) {
    %c0_i32 = arith.constant 0 : i32
    %c0_i32_0 = arith.constant 0 : i32
    %c0_i32_1 = arith.constant 0 : i32
    return %c0_i32, %c0_i32_0 : i32, i32
  }
  func.func @transform_4(%arg0: i32) -> (i32, i32) {
    %c0_i32 = arith.constant 0 : i32
    %c0_i32_0 = arith.constant 0 : i32
    %c0_i32_1 = arith.constant 0 : i32
    return %c0_i32, %c0_i32_0 : i32, i32
  }
  func.func @transform_5(%arg0: i32) -> (i32, i32) {
    %c0_i32 = arith.constant 0 : i32
    %c0_i32_0 = arith.constant 0 : i32
    return %arg0, %c0_i32 : i32, i32
  }
}

</mosaic_0001>

<bundles_post_ra>
// kernel: tpu_custom_call.1
= control target key start
LH: loop header
LB: loop body
LE: loop exit
PB: predicated region body
PF: predicated region fallthrough
CT: control target
= control target key end

     0   :  { %10 = vsyncpa [#allocation3], 0  ;;  %s1030_s0 = inlined_call_operand.vmem [shape: f32[8,10,128], index: 0, kind: input, shape index: {}]   ;;  %s1031_s1 = inlined_call_operand.hbm [shape: f32[384,128], index: 1, kind: input, shape index: {}]   ;;  %s1032_s2 = inlined_call_operand.vmem [shape: f32[1,128], index: 2, kind: input, shape index: {}]   ;;  %s1033_s3 = inlined_call_operand.vmem [shape: f32[128,128], index: 3, kind: input, shape index: {}]   ;;  %s1034_s4 = inlined_call_operand.vmem [shape: f32[1,128], index: 4, kind: input, shape index: {}]   ;;  %s1035_s5 = inlined_call_operand.hbm [shape: f32[8,128], index: 5, kind: output, shape index: {}]  }
   0x1   :  { %11 = vsyncpa [#allocation4], 0  ;;  %s833_s18 = smov [#allocation2]   ;;  %s785_s22 = scalar_lea.hbm %s1031_s1, 6144 }
   0x2   :  { %s19_s19 = sshll.u32 %s833_s18, 4  ;;  %p786_p0 = scmp.ne.s32.totalorder %s1031_s1, %s785_s22  ;;  %s20_s19 = int_to_ptr.vmem [resolvable:$true] %s19_s19 }
   0x3   :  { %p789_p1 = scmp.lt.u32.totalorder %s785_s22, %s1031_s1 }
   0x5   :  { %p791_p2 = pnand %p789_p1, %p786_p0 }
   0x7   :  { %794 = shalt.err (!%p791_p2)
}
   0x8   :  { %s795_s27 = scalar_lea.vmem %s20_s19, 6144  ;;  %p800_p4 = scmp.lt.s32.totalorder %s20_s19, %s20_s19 }
   0x9   :  { %p796_p3 = scmp.ne.s32.totalorder %s20_s19, %s795_s27  ;;  %p801_p5 = scmp.lt.s32.totalorder %s795_s27, %s795_s27 }
   0xb   :  { %p802_p6 = por %p801_p5, %p800_p4 }
   0xd   :  { %p803_p7 = pnand %p802_p6, %p796_p3 }
   0xf   :  { %806 = shalt.err (!%p803_p7)
}
  0x10   :  { %s834_s28 = smov 128   ;;  %s835_s29 = smov 8  }
  0x11   :  { %25 = dma.hbm_to_vmem [thread:$0]  %s1031_s1, 6144, %s20_s19, [#allocation3], %s834_s28, %s834_s28, %s835_s29  }
  0x12   :  { %829 = dma.done.wait [#allocation3], 6144  }
  0x13   :  { %830 = vsyncadd [#allocation3], 4294961152  ;;  %v75_v0 = vld [vmem:[#allocation2 + $0x80] sm:$0xff]  ;;  %v76_v1 = vld [vmem:[#allocation2 + $0x88] sm:$0xff]  ;;  %vm837_vm0 = vmmov 0   ;;  %vm411_vm1 = vcmask 1041409  }
  0x14   :  { %v59_v2 = vld [vmem:[#allocation2] sm:$0xff]  ;;  %v690_v3 = vpack.c.bf16 %v76_v1, %v75_v0  ;;  %v60_v4 = vld [vmem:[#allocation2 + $0x8] sm:$0xff]  ;;  %v77_v5 = vld [vmem:[#allocation2 + $0x90] sm:$0xff]  ;;  %vm413_vm2 = vcmask 1042434   ;;  %vm415_vm3 = vcmask 1043459   ;;  %vm417_vm4 = vcmask 1044484  }
  0x15   :  { %v78_v6 = vld [vmem:[#allocation2 + $0x98] sm:$0xff]  ;;  %v692_v7 = vpack.c.bf16 %v60_v4, %v59_v2  ;;  %v91_v9 = vld [vmem:[#allocation2 + $0x100] sm:$0xff]  ;;  %v92_v10 = vld [vmem:[#allocation2 + $0x108] sm:$0xff]  ;;  %vm419_vm5 = vcmask 1045509   ;;  %vm421_vm6 = vcmask 1046534   ;;  %vm423_vm7 = vcmask 1047559  }
  0x16   :  { %v694_v8 = vpack.c.bf16 %v78_v6, %v77_v5  ;;  %v61_v11 = vld [vmem:[#allocation2 + $0x10] sm:$0xff]  ;;  %691 = vmatprep.subr.bf16.mxu0 %v690_v3  ;;  %v722_v12 = vpack.c.bf16 %v92_v10, %v91_v9  ;;  %v62_v13 = vld [vmem:[#allocation2 + $0x18] sm:$0xff]  ;;  %v79_v14 = vld [vmem:[#allocation2 + $0xa0] sm:$0xff] }
  0x17   :  { %v80_v15 = vld [vmem:[#allocation2 + $0xa8] sm:$0xff]  ;;  %693 = vmatpush3.bf16.msra.mxu0 %v692_v7  ;;  %v696_v16 = vpack.c.bf16 %v62_v13, %v61_v11  ;;  %v93_v17 = vld [vmem:[#allocation2 + $0x110] sm:$0xff]  ;;  %v94_v18 = vld [vmem:[#allocation2 + $0x118] sm:$0xff] }
  0x18   :  { %695 = vmatprep.subr.bf16.mxu0 %v694_v8  ;;  %723 = vmatprep.subr.bf16.mxu1 %v722_v12  ;;  %v698_v19 = vpack.c.bf16 %v80_v15, %v79_v14  ;;  %v726_v20 = vpack.c.bf16 %v94_v18, %v93_v17  ;;  %v63_v21 = vld [vmem:[#allocation2 + $0x20] sm:$0xff]  ;;  %v64_v22 = vld [vmem:[#allocation2 + $0x28] sm:$0xff]  ;;  %v81_v23 = vld [vmem:[#allocation2 + $0xb0] sm:$0xff] }
  0x19   :  { %725 = vmatpush3.bf16.msra.mxu1 %v722_v12  ;;  %v82_v24 = vld [vmem:[#allocation2 + $0xb8] sm:$0xff]  ;;  %v95_v25 = vld [vmem:[#allocation2 + $0x120] sm:$0xff]  ;;  %v96_v26 = vld [vmem:[#allocation2 + $0x128] sm:$0xff]  ;;  %v700_v28 = vpack.c.bf16 %v64_v22, %v63_v21 }
  0x1a   :  { %727 = vmatprep.subr.bf16.mxu1 %v726_v20  ;;  %v730_v27 = vpack.c.bf16 %v96_v26, %v95_v25  ;;  %v97_v29 = vld [vmem:[#allocation2 + $0x130] sm:$0xff]  ;;  %v98_v30 = vld [vmem:[#allocation2 + $0x138] sm:$0xff]  ;;  %v702_v31 = vpack.c.bf16 %v82_v24, %v81_v23  ;;  %v83_v34 = vld [vmem:[#allocation2 + $0xc0] sm:$0xff] }
  0x1b   :  { %697 = vmatpush3.bf16.msra.mxu0 %v696_v16  ;;  %v65_v32 = vld [vmem:[#allocation2 + $0x30] sm:$0xff]  ;;  %v66_v33 = vld [vmem:[#allocation2 + $0x38] sm:$0xff]  ;;  %v84_v35 = vld [vmem:[#allocation2 + $0xc8] sm:$0xff]  ;;  %v734_v36 = vpack.c.bf16 %v98_v30, %v97_v29 }
  0x1c   :  { %699 = vmatprep.subr.bf16.mxu0 %v698_v19  ;;  %v704_v37 = vpack.c.bf16 %v66_v33, %v65_v32  ;;  %v99_v38 = vld [vmem:[#allocation2 + $0x140] sm:$0xff]  ;;  %v100_v39 = vld [vmem:[#allocation2 + $0x148] sm:$0xff]  ;;  %v706_v40 = vpack.c.bf16 %v84_v35, %v83_v34  ;;  %v85_v43 = vld [vmem:[#allocation2 + $0xd0] sm:$0xff]  ;;  %v836_v35 = vmov 0.0|0.0  }
  0x1d   :  { %729 = vmatpush3.bf16.msra.mxu1 %v726_v20  ;;  %v67_v41 = vld [vmem:[#allocation2 + $0x40] sm:$0xff]  ;;  %v68_v42 = vld [vmem:[#allocation2 + $0x48] sm:$0xff]  ;;  %v86_v44 = vld [vmem:[#allocation2 + $0xd8] sm:$0xff]  ;;  %v738_v45 = vpack.c.bf16 %v100_v39, %v99_v38 }
  0x1e   :  { %731 = vmatprep.subr.bf16.mxu1 %v730_v27  ;;  %v43_v46 = vld [vmem:[%s1030_s0 + $0x1] sm:$0xff]  ;;  %v708_v47 = vpack.c.bf16 %v68_v42, %v67_v41  ;;  %v101_v48 = vld [vmem:[#allocation2 + $0x150] sm:$0xff]  ;;  %v102_v49 = vld [vmem:[#allocation2 + $0x158] sm:$0xff]  ;;  %v710_v50 = vpack.c.bf16 %v86_v44, %v85_v43 }
  0x1f   :  { %701 = vmatpush3.bf16.msra.mxu0 %v700_v28  ;;  %178 = vmatprep.mubr.f32.mxu0 %v43_v46  ;;  %v69_v51 = vld [vmem:[#allocation2 + $0x50] sm:$0xff]  ;;  %v70_v52 = vld [vmem:[#allocation2 + $0x58] sm:$0xff]  ;;  %v51_v53 = vld [vmem:[%s1030_s0 + $0x2] sm:$0xff]  ;;  %v742_v56 = vpack.c.bf16 %v102_v49, %v101_v48 }
  0x20   :  { %703 = vmatprep.subr.bf16.mxu0 %v702_v31  ;;  %v87_v54 = vld [vmem:[#allocation2 + $0xe0] sm:$0xff]  ;;  %v88_v55 = vld [vmem:[#allocation2 + $0xe8] sm:$0xff]  ;;  %643 = vmatprep.mubr.f32.mxu1 %v51_v53  ;;  %v712_v57 = vpack.c.bf16 %v70_v52, %v69_v51  ;;  %v89_v63 = vld [vmem:[#allocation2 + $0xf0] sm:$0xff] }
  0x21   :  { %733 = vmatpush3.bf16.msra.mxu1 %v730_v27  ;;  %v103_v58 = vld [vmem:[#allocation2 + $0x160] sm:$0xff]  ;;  %v104_v59 = vld [vmem:[#allocation2 + $0x168] sm:$0xff]  ;;  %v714_v60 = vpack.c.bf16 %v88_v55, %v87_v54  ;;  %v90_v0 = vld [vmem:[#allocation2 + $0xf8] sm:$0xff] }
  0x22   :  { %735 = vmatprep.subr.bf16.mxu1 %v734_v36  ;;  %v71_v61 = vld [vmem:[#allocation2 + $0x60] sm:$0xff]  ;;  %v72_v62 = vld [vmem:[#allocation2 + $0x68] sm:$0xff]  ;;  %v746_v1 = vpack.c.bf16 %v104_v59, %v103_v58  ;;  %v105_v3 = vld [vmem:[#allocation2 + $0x170] sm:$0xff]  ;;  %v718_v5 = vpack.c.bf16 %v90_v0, %v89_v63 }
  0x23   :  { %705 = vmatpush3.bf16.msra.mxu0 %v704_v37  ;;  %v716_v2 = vpack.c.bf16 %v72_v62, %v71_v61  ;;  %v106_v4 = vld [vmem:[#allocation2 + $0x178] sm:$0xff]  ;;  %v73_v6 = vld [vmem:[#allocation2 + $0x70] sm:$0xff]  ;;  %v35_v10 = vld [vmem:[%s1030_s0] sm:$0xff] }
  0x24   :  { %707 = vmatprep.subr.bf16.mxu0 %v706_v40  ;;  %v74_v7 = vld [vmem:[#allocation2 + $0x78] sm:$0xff]  ;;  %v750_v8 = vpack.c.bf16 %v106_v4, %v105_v3  ;;  %v53_v13 = vld [vmem:[%s1030_s0 + $0x22] sm:$0xff]  ;;  %v36_v14 = vld [vmem:[%s1030_s0 + $0x10] sm:$0xff] }
  0x25   :  { %737 = vmatpush3.bf16.msra.mxu1 %v734_v36  ;;  %v720_v9 = vpack.c.bf16 %v74_v7, %v73_v6  ;;  %v44_v11 = vld [vmem:[%s1030_s0 + $0x11] sm:$0xff]  ;;  %v45_v15 = vld [vmem:[%s1030_s0 + $0x21] sm:$0xff] }
  0x26   :  { %739 = vmatprep.subr.bf16.mxu1 %v738_v45  ;;  %v52_v12 = vld [vmem:[%s1030_s0 + $0x12] sm:$0xff]  ;;  %v55_v17 = vld [vmem:[%s1030_s0 + $0x42] sm:$0xff] }
  0x27   :  { %709 = vmatpush3.bf16.msra.mxu0 %v708_v47  ;;  %v54_v16 = vld [vmem:[%s1030_s0 + $0x32] sm:$0xff]  ;;  %v37_v18 = vld [vmem:[%s1030_s0 + $0x20] sm:$0xff]  ;;  %v381_v33 = vld [vmem:[%s1033_s3 + $0x8] sm:$0xff] }
  0x28   :  { %711 = vmatprep.subr.bf16.mxu0 %v710_v50  ;;  %v46_v19 = vld [vmem:[%s1030_s0 + $0x31] sm:$0xff]  ;;  %v57_v21 = vld [vmem:[%s1030_s0 + $0x62] sm:$0xff] }
  0x29   :  { %741 = vmatpush3.bf16.msra.mxu1 %v738_v45  ;;  %v56_v20 = vld [vmem:[%s1030_s0 + $0x52] sm:$0xff]  ;;  %v47_v23 = vld [vmem:[%s1030_s0 + $0x41] sm:$0xff] }
  0x2a   :  { %743 = vmatprep.subr.bf16.mxu1 %v742_v56  ;;  %v38_v22 = vld [vmem:[%s1030_s0 + $0x30] sm:$0xff]  ;;  %v39_v25 = vld [vmem:[%s1030_s0 + $0x40] sm:$0xff]  ;;  %v383_v37 = vld [vmem:[%s1033_s3 + $0x18] sm:$0xff] }
  0x2b   :  { %713 = vmatpush3.bf16.msra.mxu0 %v712_v57  ;;  %v58_v24 = vld [vmem:[%s1030_s0 + $0x72] sm:$0xff]  ;;  %v49_v28 = vld [vmem:[%s1030_s0 + $0x61] sm:$0xff]  ;;  %v838_v57 = vmov 0.0  }
  0x2c   :  { %715 = vmatprep.subr.bf16.mxu0 %v714_v60  ;;  %v48_v26 = vld [vmem:[%s1030_s0 + $0x51] sm:$0xff]  ;;  %v41_v29 = vld [vmem:[%s1030_s0 + $0x60] sm:$0xff]  ;;  %v385_v40 = vld [vmem:[%s1033_s3 + $0x28] sm:$0xff] }
  0x2d   :  { %745 = vmatpush3.bf16.msra.mxu1 %v742_v56  ;;  %v40_v27 = vld [vmem:[%s1030_s0 + $0x50] sm:$0xff]  ;;  %v380_v32 = vld [vmem:[%s1033_s3] sm:$0xff]  ;;  %v387_v43 = vld [vmem:[%s1033_s3 + $0x38] sm:$0xff] }
  0x2e   :  { %747 = vmatprep.subr.bf16.mxu1 %v746_v1  ;;  %v50_v30 = vld [vmem:[%s1030_s0 + $0x71] sm:$0xff]  ;;  %v755_v34 = vpack.c.bf16 %v381_v33, %v380_v32  ;;  %v384_v39 = vld [vmem:[%s1033_s3 + $0x20] sm:$0xff]  ;;  %v389_v46 = vld [vmem:[%s1033_s3 + $0x48] sm:$0xff] }
  0x2f   :  { %717 = vmatpush3.bf16.msra.mxu0 %v716_v2  ;;  %v42_v31 = vld [vmem:[%s1030_s0 + $0x70] sm:$0xff]  ;;  %v761_v41 = vpack.c.bf16 %v385_v40, %v384_v39  ;;  %v388_v45 = vld [vmem:[%s1033_s3 + $0x40] sm:$0xff]  ;;  %v391_v49 = vld [vmem:[%s1033_s3 + $0x58] sm:$0xff]  ;;  %s839_s0 = smov [#allocation5]  }
  0x30   :  { %719 = vmatprep.subr.bf16.mxu0 %v718_v5  ;;  %v382_v36 = vld [vmem:[%s1033_s3 + $0x10] sm:$0xff]  ;;  %v767_v47 = vpack.c.bf16 %v389_v46, %v388_v45  ;;  %v392_v51 = vld [vmem:[%s1033_s3 + $0x60] sm:$0xff]  ;;  %v393_v52 = vld [vmem:[%s1033_s3 + $0x68] sm:$0xff]  ;;  %s503_s9 = sshll.u32 %s839_s0, 4  ;;  %s504_s9 = int_to_ptr.vmem [resolvable:$true] %s503_s9 }
  0x31   :  { %749 = vmatpush3.bf16.msra.mxu1 %v746_v1  ;;  %v758_v38 = vpack.c.bf16 %v383_v37, %v382_v36  ;;  %v386_v42 = vld [vmem:[%s1033_s3 + $0x30] sm:$0xff]  ;;  %v773_v53 = vpack.c.bf16 %v393_v52, %v392_v51  ;;  %v395_v55 = vld [vmem:[%s1033_s3 + $0x78] sm:$0xff]  ;;  %v1005_v60 = vld [vmem:[%s1032_s2] ss:$0 sm:$0xff]  ;;  %s807_s10 = scalar_lea.vmem %s504_s9, 128  ;;  %p812_p9 = scmp.lt.s32.totalorder %s504_s9, %s504_s9 }
  0x32   :  { %751 = vmatprep.subr.bf16.mxu1 %v750_v8  ;;  %v764_v44 = vpack.c.bf16 %v387_v43, %v386_v42  ;;  %v390_v48 = vld [vmem:[%s1033_s3 + $0x50] sm:$0xff]  ;;  %p808_p8 = scmp.ne.s32.totalorder %s504_s9, %s807_s10  ;;  %p813_p10 = scmp.lt.s32.totalorder %s807_s10, %s807_s10 }
  0x33   :  { %721 = vmatpush3.bf16.msra.mxu0 %v720_v9  ;;  %v770_v50 = vpack.c.bf16 %v391_v49, %v390_v48  ;;  %v394_v54 = vld [vmem:[%s1033_s3 + $0x70] sm:$0xff] }
  0x34   :  { %754 = vmatprep.subr.bf16.mxu0 %v836_v35  ;;  %v776_v56 = vpack.c.bf16 %v395_v55, %v394_v54  ;;  %p814_p11 = por %p813_p10, %p812_p9 }
  0x35   :  { %753 = vmatpush3.bf16.msra.mxu1 %v750_v8 }
  0x36   :  { %179 = vmatmul.mubr.f32.vlgmr.msra.gmra.mrb[0].mxu0 %v35_v10  ;;  %p815_p12 = pnand %p814_p11, %p808_p8 }
  0x37   :  { %183 = vmatprep.mubr.f32.mxu0 %v44_v11  ;;  %756 = vmatpush3.bf16.msra.mxu0 %v755_v34 }
  0x38   :  { %644 = vmatmul.mubr.f32.vlgmr.msra.gmra.mrb[0].mxu1 %v52_v12  ;;  %757 = vmatprep.subr.bf16.mxu0 %v836_v35 }
  0x39   :  { %646 = vmatprep.mubr.f32.mxu1 %v53_v13 }
  0x3a   :  { %184 = vmatmul.mubr.f32.gmra.mrb[2].mxu0 %v36_v14 }
  0x3b   :  { %188 = vmatprep.mubr.f32.mxu0 %v45_v15  ;;  %759 = vmatpush3.bf16.msra.mxu0 %v758_v38 }
  0x3c   :  { %647 = vmatmul.mubr.f32.gmra.mrb[2].mxu1 %v54_v16  ;;  %760 = vmatprep.subr.bf16.mxu0 %v836_v35 }
  0x3d   :  { %649 = vmatprep.mubr.f32.mxu1 %v55_v17 }
  0x3e   :  { %189 = vmatmul.mubr.f32.gmra.mrb[4].mxu0 %v37_v18 }
  0x3f   :  { %193 = vmatprep.mubr.f32.mxu0 %v46_v19  ;;  %762 = vmatpush3.bf16.msra.mxu0 %v761_v41 }
  0x40   :  { %650 = vmatmul.mubr.f32.gmra.mrb[4].mxu1 %v56_v20  ;;  %763 = vmatprep.subr.bf16.mxu0 %v836_v35 }
  0x41   :  { %652 = vmatprep.mubr.f32.mxu1 %v57_v21 }
  0x42   :  { %194 = vmatmul.mubr.f32.gmra.mrb[6].mxu0 %v38_v22 }
  0x43   :  { %198 = vmatprep.mubr.f32.mxu0 %v47_v23  ;;  %765 = vmatpush3.bf16.msra.mxu0 %v764_v44 }
  0x44   :  { %653 = vmatmul.mubr.f32.gmra.mrb[6].mxu1 %v58_v24  ;;  %766 = vmatprep.subr.bf16.mxu0 %v836_v35 }
  0x46   :  { %199 = vmatmul.mubr.f32.gmra.mrb[8].mxu0 %v39_v25 }
  0x47   :  { %203 = vmatprep.mubr.f32.mxu0 %v48_v26  ;;  %768 = vmatpush3.bf16.msra.mxu0 %v767_v47 }
  0x48   :  { %769 = vmatprep.subr.bf16.mxu0 %v836_v35 }
  0x4a   :  { %204 = vmatmul.mubr.f32.gmra.mrb[10].mxu0 %v40_v27 }
  0x4b   :  { %208 = vmatprep.mubr.f32.mxu0 %v49_v28  ;;  %771 = vmatpush3.bf16.msra.mxu0 %v770_v50 }
  0x4c   :  { %772 = vmatprep.subr.bf16.mxu0 %v836_v35 }
  0x4e   :  { %209 = vmatmul.mubr.f32.gmra.mrb[12].mxu0 %v41_v29 }
  0x4f   :  { %213 = vmatprep.mubr.f32.mxu0 %v50_v30  ;;  %774 = vmatpush3.bf16.msra.mxu0 %v773_v53 }
  0x50   :  { %775 = vmatprep.subr.bf16.mxu0 %v836_v35 }
  0x52   :  { %214 = vmatmul.mubr.f32.gmra.mrb[14].mxu0 %v42_v31 }
  0x53   :  { %687 = vmatprep.mubr.msk.f32.mxu0 %vm837_vm0, %v838_v57  ;;  %777 = vmatpush3.bf16.msra.mxu0 %v776_v56 }
 0x109   :  { %v546_v58 = vpop.f32.mrb[0].mxu0 }
 0x10a   :  { %v547_v59 = vpop.f32.mrb[1].mxu0 }
 0x10b   :  { %v548_v61 = vadd.f32 %v547_v59, %v546_v58  ;;  %v645_v62 = vpop.f32.mrb[0].mxu1 }
 0x10c   :  { %v285_v63 = vpop.f32.mrb[1].mxu1 }
 0x10d   :  { %v549_v0 = vpop.f32.mrb[2].mxu0  ;;  %v181_v1 = vadd.f32 %v548_v61, %v1005_v60 }
 0x10e   :  { %v550_v2 = vpop.f32.mrb[3].mxu0 }
 0x10f   :  { %v551_v3 = vadd.f32 %v550_v2, %v549_v0  ;;  %v286_v4 = vadd.f32 %v285_v63, %v181_v1  ;;  %v648_v5 = vpop.f32.mrb[2].mxu1 }
 0x110   :  { %v295_v6 = vpop.f32.mrb[3].mxu1 }
 0x111   :  { %v186_v7 = vadd.f32 %v551_v3, %v1005_v60  ;;  %v324_v8 = vmax.f32 %v286_v4, 0.0  ;;  %v552_v9 = vpop.f32.mrb[4].mxu0 }
 0x112   :  { %v553_v10 = vpop.f32.mrb[5].mxu0 }
 0x113   :  { %v291_v11 = vadd.f32 %v645_v62, %v186_v7  ;;  %v332_v12 = vrot.slane %v324_v8, 4  ;;  %v554_v13 = vadd.f32 %v553_v10, %v552_v9  ;;  %v651_v14 = vpop.f32.mrb[4].mxu1 }
 0x114   :  { %v305_v15 = vpop.f32.mrb[5].mxu1 }
 0x115   :  { %v325_v16 = vmax.f32 %v291_v11, 0.0  ;;  %v333_v17 = vmax.f32 %v324_v8, %v332_v12  ;;  %v555_v18 = vpop.f32.mrb[6].mxu0  ;;  %v191_v19 = vadd.f32 %v554_v13, %v1005_v60 }
 0x116   :  { %v556_v20 = vpop.f32.mrb[7].mxu0 }
 0x117   :  { %v338_v21 = vrot.slane %v325_v16, 4  ;;  %v334_v22 = vrot.slane %v333_v17, 2  ;;  %v557_v23 = vadd.f32 %v556_v20, %v555_v18  ;;  %v296_v24 = vadd.f32 %v295_v6, %v191_v19  ;;  %v654_v25 = vpop.f32.mrb[6].mxu1 }
 0x118   :  { %v315_v26 = vpop.f32.mrb[7].mxu1 }
 0x119   :  { %v339_v27 = vmax.f32 %v325_v16, %v338_v21  ;;  %v335_v28 = vmax.f32 %v333_v17, %v334_v22  ;;  %v196_v29 = vadd.f32 %v557_v23, %v1005_v60  ;;  %v326_v30 = vmax.f32 %v296_v24, 0.0  ;;  %v558_v31 = vpop.f32.mrb[8].mxu0 }
 0x11a   :  { %v559_v32 = vpop.f32.mrb[9].mxu0 }
 0x11b   :  { %v340_v33 = vrot.slane %v339_v27, 2  ;;  %v301_v34 = vadd.f32 %v648_v5, %v196_v29  ;;  %v344_v35 = vrot.slane %v326_v30, 4  ;;  %v336_v36 = vrot.slane %v335_v28, 1 }
 0x11c   :  { %v560_v37 = vadd.f32 %v559_v32, %v558_v31 }
 0x11d   :  { %v341_v38 = vmax.f32 %v339_v27, %v340_v33  ;;  %v327_v39 = vmax.f32 %v301_v34, 0.0  ;;  %v345_v40 = vmax.f32 %v326_v30, %v344_v35  ;;  %v561_v41 = vpop.f32.mrb[10].mxu0  ;;  %v337_v48 = vmax.f32 %v335_v28, %v336_v36 }
 0x11e   :  { %v562_v42 = vpop.f32.mrb[11].mxu0  ;;  %v201_v43 = vadd.f32 %v560_v37, %v1005_v60 }
 0x11f   :  { %v342_v44 = vrot.slane %v341_v38, 1  ;;  %v350_v45 = vrot.slane %v327_v39, 4  ;;  %v346_v46 = vrot.slane %v345_v40, 2  ;;  %v563_v47 = vadd.f32 %v562_v42, %v561_v41  ;;  %v513_v42 = vld [vmem:[%s1034_s4] ss:$0 sm:$0xff] }
 0x120   :  { %v306_v49 = vadd.f32 %v305_v15, %v201_v43 }
 0x121   :  { %v343_v50 = vmax.f32 %v341_v38, %v342_v44  ;;  %v351_v51 = vmax.f32 %v327_v39, %v350_v45  ;;  %v347_v52 = vmax.f32 %v345_v40, %v346_v46  ;;  %v206_v53 = vadd.f32 %v563_v47, %v1005_v60  ;;  %v564_v54 = vpop.f32.mrb[12].mxu0 }
 0x122   :  { %v328_v55 = vmax.f32 %v306_v49, 0.0  ;;  %v565_v56 = vpop.f32.mrb[13].mxu0 }
 0x123   :  { %v412_v57 = vsel %vm411_vm1, %v343_v50, %v337_v48  ;;  %v352_v58 = vrot.slane %v351_v51, 2  ;;  %v348_v59 = vrot.slane %v347_v52, 1  ;;  %v311_v61 = vadd.f32 %v651_v14, %v206_v53 }
 0x124   :  { %v356_v62 = vrot.slane %v328_v55, 4  ;;  %v566_v63 = vadd.f32 %v565_v56, %v564_v54 }
 0x125   :  { %v353_v0 = vmax.f32 %v351_v51, %v352_v58  ;;  %v349_v1 = vmax.f32 %v347_v52, %v348_v59  ;;  %v329_v2 = vmax.f32 %v311_v61, 0.0  ;;  %v567_v3 = vpop.f32.mrb[14].mxu0 }
 0x126   :  { %v357_v4 = vmax.f32 %v328_v55, %v356_v62  ;;  %v568_v5 = vpop.f32.mrb[15].mxu0  ;;  %v211_v6 = vadd.f32 %v566_v63, %v1005_v60 }
 0x127   :  { %v354_v7 = vrot.slane %v353_v0, 1  ;;  %v414_v8 = vsel %vm413_vm2, %v349_v1, %v412_v57  ;;  %v362_v9 = vrot.slane %v329_v2, 4  ;;  %v569_v10 = vadd.f32 %v568_v5, %v567_v3 }
 0x128   :  { %v358_v11 = vrot.slane %v357_v4, 2  ;;  %v316_v12 = vadd.f32 %v315_v26, %v211_v6 }
 0x129   :  { %v355_v13 = vmax.f32 %v353_v0, %v354_v7  ;;  %v363_v14 = vmax.f32 %v329_v2, %v362_v9  ;;  %v216_v15 = vadd.f32 %v569_v10, %v1005_v60 }
 0x12a   :  { %v359_v16 = vmax.f32 %v357_v4, %v358_v11  ;;  %v330_v17 = vmax.f32 %v316_v12, 0.0 }
 0x12b   :  { %v364_v18 = vrot.slane %v363_v14, 2  ;;  %v416_v19 = vsel %vm415_vm3, %v355_v13, %v414_v8  ;;  %v321_v20 = vadd.f32 %v654_v25, %v216_v15 }
 0x12c   :  { %v360_v21 = vrot.slane %v359_v16, 1  ;;  %v368_v22 = vrot.slane %v330_v17, 4 }
 0x12d   :  { %v365_v23 = vmax.f32 %v363_v14, %v364_v18  ;;  %v331_v24 = vmax.f32 %v321_v20, 0.0 }
 0x12e   :  { %v361_v27 = vmax.f32 %v359_v16, %v360_v21  ;;  %v369_v28 = vmax.f32 %v330_v17, %v368_v22 }
 0x12f   :  { %v366_v29 = vrot.slane %v365_v23, 1  ;;  %v374_v30 = vrot.slane %v331_v24, 4 }
 0x130   :  { %v418_v31 = vsel %vm417_vm4, %v361_v27, %v416_v19  ;;  %v370_v26 = vrot.slane %v369_v28, 2 }
 0x131   :  { %v367_v32 = vmax.f32 %v365_v23, %v366_v29  ;;  %v375_v33 = vmax.f32 %v331_v24, %v374_v30 }
 0x132   :  { %v371_v60 = vmax.f32 %v369_v28, %v370_v26 }
 0x133   :  { %v376_v34 = vrot.slane %v375_v33, 2  ;;  %v420_v35 = vsel %vm419_vm5, %v367_v32, %v418_v31 }
 0x134   :  { %v372_v36 = vrot.slane %v371_v60, 1 }
 0x135   :  { %v377_v37 = vmax.f32 %v375_v33, %v376_v34 }
 0x136   :  { %v373_v25 = vmax.f32 %v371_v60, %v372_v36 }
 0x137   :  { %v378_v38 = vrot.slane %v377_v37, 1 }
 0x138   :  { %v422_v39 = vsel %vm421_vm6, %v373_v25, %v420_v35 }
 0x139   :  { %v379_v40 = vmax.f32 %v377_v37, %v378_v38 }
 0x13b   :  { %v424_v41 = vsel %vm423_vm7, %v379_v40, %v422_v39 }
 0x13c   :  { %688 = vmatmul.mubr.f32.vlgmr.msra.gmra.mrb[16].mxu0 %v424_v41 }
 0x20f   :  { %v492_v43 = vpop.f32.mrb[16].mxu0 }
 0x210   :  { %v493_v44 = vadd.f32 %v513_v42, %v492_v43  ;;  %v689_v45 = vpop.f32.mrb[17].mxu0 }
 0x212   :  { %496 = vst [vmem:[#allocation5] sm:$0xff] %v493_v44 }
 0x213   :  { %818 = shalt.err (!%p815_p12)
}
 0x214   :  { %s819_s13 = scalar_lea.hbm %s1035_s5, 128 }
 0x215   :  { %p820_p13 = scmp.ne.s32.totalorder %s1035_s5, %s819_s13  ;;  %p823_p0 = scmp.lt.u32.totalorder %s819_s13, %s1035_s5 }
 0x217   :  { %p825_p1 = pnand %p823_p0, %p820_p13 }
 0x219   :  { %828 = shalt.err (!%p825_p1)
}
 0x21a   :  { %506 = dma.vmem_to_hbm [thread:$0]  %s504_s9, 128, %s1035_s5, [#allocation4]  }
 0x21b   :  { %831 = dma.done.wait [#allocation4], 128  }
 0x21c   :  { %832 = vsyncadd [#allocation4], 4294967168 }
 0x21d   :  { %510 = vsyncpa [#allocation3], 1 }
 0x21e   :  { %511 = vsyncpa [#allocation4], 1 }

</bundles_post_ra>
